<compile_context>
chip_gen: v7x
topology: tpu7x:2x2x1
jax: 0.10.0
libtpu: 0.0.40
codegen_flags: <defaults>
</compile_context>

<pallas_src>
import functools

import jax
import jax.numpy as jnp
from jax.experimental import pallas as pl
from jax.experimental.pallas import tpu as pltpu

# -------------------- model dimensions (small, synthetic) --------------------
BATCH = 2
SEQ = 8
HIDDEN = 32
FFN = 4 * HIDDEN
VOCAB = 64
NUM_LABELS_1 = 3
NUM_LABELS_2 = 5
HEAD_PAD = 128          # lane-dense fused-head output width (>= L1 + L2)
LN_EPS = 1e-12


# ------------------------------ Pallas kernel -------------------------------
def _layer_norm(x, gamma, beta):
    mu = jnp.mean(x, axis=-1, keepdims=True)
    var = jnp.mean((x - mu) ** 2, axis=-1, keepdims=True)
    return (x - mu) * jax.lax.rsqrt(var + LN_EPS) * gamma + beta


def fused_model_kernel(x_ref, bias_ref,
                       wq_ref, bq_ref, wk_ref, bk_ref, wv_ref, bv_ref,
                       wo_ref, bo_ref, ln1_g_ref, ln1_b_ref,
                       w1_ref, b1_ref, w2_ref, b2_ref,
                       ln2_g_ref, ln2_b_ref,
                       wh_ref, bh_ref,
                       enc_ref, head_ref, *, bt, s):
    """Fused encoder layer + both linear heads over the whole batch.

    x_ref    : [bt*s, H]       f32 embeddings (flattened batch*seq rows)
    bias_ref : [bt, 1, s]      f32 additive attention mask ((mask - 1) * 1e9)
    w*_ref   : pre-transposed [in, out] bf16 weights; biases / LN params f32
    enc_ref  : [bt*s, H]       f32 last_hidden_state
    head_ref : [bt*s, HEAD_PAD] f32 fused head logits (zero-padded lanes)
    """
    x = x_ref[...]                                   # [bt*s, H] f32
    xb = x.astype(jnp.bfloat16)

    # --- self-attention projections (1/sqrt(H) folded into wq/bq at init) ---
    q = jnp.dot(xb, wq_ref[...], preferred_element_type=jnp.float32) + bq_ref[...]
    k = jnp.dot(xb, wk_ref[...], preferred_element_type=jnp.float32) + bk_ref[...]
    v = jnp.dot(xb, wv_ref[...], preferred_element_type=jnp.float32) + bv_ref[...]

    q3 = q.reshape(bt, s, HIDDEN)
    k3 = k.reshape(bt, s, HIDDEN)
    v3 = v.reshape(bt, s, HIDDEN)

    scores = jnp.einsum("bqd,bkd->bqk", q3, k3,
                        preferred_element_type=jnp.float32)      # [bt, s, s]
    scores = scores + bias_ref[...]                               # pad mask
    scores = scores - jnp.max(scores, axis=-1, keepdims=True)
    p = jnp.exp(scores)
    p = p * pl.reciprocal(jnp.sum(p, axis=-1, keepdims=True), approx=True)

    ctx = jnp.einsum("bqk,bkd->bqd", p, v3,
                     preferred_element_type=jnp.float32)          # [bt, s, H]
    ctx = ctx.reshape(bt * s, HIDDEN)

    attn_out = jnp.dot(ctx.astype(jnp.bfloat16), wo_ref[...],
                       preferred_element_type=jnp.float32) + bo_ref[...]
    h = _layer_norm(x + attn_out, ln1_g_ref[...], ln1_b_ref[...])

    # --- feed-forward ---
    f = jnp.dot(h.astype(jnp.bfloat16), w1_ref[...],
                preferred_element_type=jnp.float32) + b1_ref[...]
    # TODO(synk): torch nn.GELU defaults to exact erf; tanh approximation kept
    # here (synthetic encoder, no checkpoint parity required).
    f = jax.nn.gelu(f, approximate=True)
    f = jnp.dot(f.astype(jnp.bfloat16), w2_ref[...],
                preferred_element_type=jnp.float32) + b2_ref[...]
    out = _layer_norm(h + f, ln2_g_ref[...], ln2_b_ref[...])

    enc_ref[...] = out

    # --- fused heads (head1 ++ head2, zero-padded to 128 output lanes) ---
    head_ref[...] = jnp.dot(out.astype(jnp.bfloat16), wh_ref[...],
                            preferred_element_type=jnp.float32) + bh_ref[...]


# ------------------------------ wrapper --------------------------------
def _vmem_spec():
    # whole array resident in VMEM, single (grid-less) invocation
    return pl.BlockSpec(memory_space=pltpu.MemorySpace.VMEM)


def fused_forward(x_flat, bias, kp, bt, s):
    rows = bt * s
    args = (x_flat, bias,
            kp["wq"], kp["bq"], kp["wk"], kp["bk"], kp["wv"], kp["bv"],
            kp["wo"], kp["bo"], kp["ln1_g"], kp["ln1_b"],
            kp["w1"], kp["b1"], kp["w2"], kp["b2"],
            kp["ln2_g"], kp["ln2_b"], kp["head_w"], kp["head_b"])
    enc_flat, head_flat = pl.pallas_call(
        functools.partial(fused_model_kernel, bt=bt, s=s),
        out_shape=(jax.ShapeDtypeStruct((rows, HIDDEN), jnp.float32),
                   jax.ShapeDtypeStruct((rows, HEAD_PAD), jnp.float32)),
        in_specs=[_vmem_spec() for _ in args],
        out_specs=(_vmem_spec(), _vmem_spec()),
    )(*args)
    return enc_flat, head_flat


# ------------------------------ parameters --------------------------------
def init_params(key):
    """PyTorch-layout parameters: nn.Linear weights are [out_features, in_features]."""
    ks = jax.random.split(key, 10)

    def norm(k, shape, scale=0.02):
        return scale * jax.random.normal(k, shape, jnp.float32)

    return dict(
        tok_emb=norm(ks[0], (VOCAB, HIDDEN)),
        pos_emb=norm(ks[1], (SEQ, HIDDEN)),
        wq=norm(ks[2], (HIDDEN, HIDDEN)), bq=jnp.zeros((1, HIDDEN), jnp.float32),
        wk=norm(ks[3], (HIDDEN, HIDDEN)), bk=jnp.zeros((1, HIDDEN), jnp.float32),
        wv=norm(ks[4], (HIDDEN, HIDDEN)), bv=jnp.zeros((1, HIDDEN), jnp.float32),
        wo=norm(ks[5], (HIDDEN, HIDDEN)), bo=jnp.zeros((1, HIDDEN), jnp.float32),
        ln1_g=jnp.ones((1, HIDDEN), jnp.float32), ln1_b=jnp.zeros((1, HIDDEN), jnp.float32),
        w1=norm(ks[6], (FFN, HIDDEN)), b1=jnp.zeros((1, FFN), jnp.float32),
        w2=norm(ks[7], (HIDDEN, FFN)), b2=jnp.zeros((1, HIDDEN), jnp.float32),
        ln2_g=jnp.ones((1, HIDDEN), jnp.float32), ln2_b=jnp.zeros((1, HIDDEN), jnp.float32),
        head1_w=norm(ks[8], (NUM_LABELS_1, HIDDEN)),
        head1_b=jnp.zeros((1, NUM_LABELS_1), jnp.float32),
        head2_w=norm(ks[9], (NUM_LABELS_2, HIDDEN)),
        head2_b=jnp.zeros((1, NUM_LABELS_2), jnp.float32),
    )


def _prepare_kernel_params(p):
    """One-time layout plumbing: pre-transpose to [in,out], fold attention scale,
    fuse + lane-pad the two heads, cast MXU operands to bf16."""
    scale = 1.0 / jnp.sqrt(jnp.float32(HIDDEN))
    l12 = NUM_LABELS_1 + NUM_LABELS_2

    head_w = jnp.concatenate([p["head1_w"], p["head2_w"]], axis=0)    # [L1+L2, H]
    head_b = jnp.concatenate([p["head1_b"], p["head2_b"]], axis=1)    # [1, L1+L2]
    head_w_t = jnp.zeros((HIDDEN, HEAD_PAD), jnp.float32).at[:, :l12].set(head_w.T)
    head_b_p = jnp.zeros((1, HEAD_PAD), jnp.float32).at[:, :l12].set(head_b)

    bf = lambda w: w.astype(jnp.bfloat16)
    return dict(
        wq=bf(p["wq"].T * scale), bq=p["bq"] * scale,
        wk=bf(p["wk"].T), bk=p["bk"],
        wv=bf(p["wv"].T), bv=p["bv"],
        wo=bf(p["wo"].T), bo=p["bo"],
        ln1_g=p["ln1_g"], ln1_b=p["ln1_b"],
        w1=bf(p["w1"].T), b1=p["b1"],
        w2=bf(p["w2"].T), b2=p["b2"],
        ln2_g=p["ln2_g"], ln2_b=p["ln2_b"],
        head_w=bf(head_w_t), head_b=head_b_p,
    )


# ------------------------------ the module --------------------------------
class MultiTaskModelPallas:
    """Mirrors MultiTaskModel.forward: shared encoder, per-task linear heads."""

    def __init__(self, params):
        self.params = params
        self.kparams = _prepare_kernel_params(params)

    def _embed(self, input_ids):
        emb = jnp.take(self.params["tok_emb"], input_ids, axis=0)
        emb = emb + self.params["pos_emb"][None, :, :]
        return emb.astype(jnp.float32)

    def _encode_with_heads(self, input_ids, attention_mask):
        bt, s = input_ids.shape
        x_flat = self._embed(input_ids).reshape(bt * s, HIDDEN)
        bias = (attention_mask.astype(jnp.float32) - 1.0)[:, None, :] * 1e9   # [bt,1,s]
        enc_flat, head_flat = fused_forward(x_flat, bias, self.kparams, bt, s)
        enc = enc_flat.reshape(bt, s, HIDDEN)
        heads = head_flat.reshape(bt, s, HEAD_PAD)[:, :, :NUM_LABELS_1 + NUM_LABELS_2]
        return enc, heads

    def __call__(self, input1=None, input2=None):
        output1, output2 = None, None
        encoder_output1, encoder_output2 = None, None
        if input1 is not None and input2 is not None:
            # Shared encoder weights: run both tasks in ONE fused kernel call.
            b1 = input1["input_ids"].shape[0]
            ids = jnp.concatenate([input1["input_ids"], input2["input_ids"]], axis=0)
            msk = jnp.concatenate([input1["attention_mask"],
                                   input2["attention_mask"]], axis=0)
            enc, heads = self._encode_with_heads(ids, msk)
            encoder_output1, encoder_output2 = enc[:b1], enc[b1:]
            output1 = heads[:b1, :, :NUM_LABELS_1]
            output2 = heads[b1:, :, NUM_LABELS_1:]
        elif input1 is not None:
            encoder_output1, heads = self._encode_with_heads(**input1)
            output1 = heads[:, :, :NUM_LABELS_1]
        elif input2 is not None:
            encoder_output2, heads = self._encode_with_heads(**input2)
            output2 = heads[:, :, NUM_LABELS_1:]
        return ((output1, output2), (encoder_output1, encoder_output2))


# ------------------------------ demo / smoke test --------------------------------
if __name__ == "__main__":
    key = jax.random.PRNGKey(0)
    pkey, ikey1, ikey2 = jax.random.split(key, 3)
    params = init_params(pkey)
    model = MultiTaskModelPallas(params)

    input_ids1 = jax.random.randint(ikey1, (BATCH, SEQ), 0, VOCAB)
    attn_mask1 = jnp.ones((BATCH, SEQ), jnp.int32)
    input_ids2 = jax.random.randint(ikey2, (BATCH, SEQ), 0, VOCAB)
    attn_mask2 = jnp.ones((BATCH, SEQ), jnp.int32).at[:, SEQ - 2:].set(0)

    input1 = {"input_ids": input_ids1, "attention_mask": attn_mask1}
    input2 = {"input_ids": input_ids2, "attention_mask": attn_mask2}

    (out1, out2), (enc1, enc2) = model(input1=input1, input2=input2)
    jax.block_until_ready((out1, out2, enc1, enc2))

    assert out1.shape == (BATCH, SEQ, NUM_LABELS_1)
    assert out2.shape == (BATCH, SEQ, NUM_LABELS_2)
    assert enc1.shape == (BATCH, SEQ, HIDDEN)
    assert enc2.shape == (BATCH, SEQ, HIDDEN)
    print("KERNEL_OK")
</pallas_src>

<mosaic_0001>
module attributes {stable_mosaic.version = 11 : i64} {
  func.func @fused_model_kernel(%arg0: memref<32x32xf32, #tpu.memory_space<vmem>>, %arg1: memref<4x1x8xf32, #tpu.memory_space<vmem>>, %arg2: memref<32x32xbf16, #tpu.memory_space<vmem>>, %arg3: memref<1x32xf32, #tpu.memory_space<vmem>>, %arg4: memref<32x32xbf16, #tpu.memory_space<vmem>>, %arg5: memref<1x32xf32, #tpu.memory_space<vmem>>, %arg6: memref<32x32xbf16, #tpu.memory_space<vmem>>, %arg7: memref<1x32xf32, #tpu.memory_space<vmem>>, %arg8: memref<32x32xbf16, #tpu.memory_space<vmem>>, %arg9: memref<1x32xf32, #tpu.memory_space<vmem>>, %arg10: memref<1x32xf32, #tpu.memory_space<vmem>>, %arg11: memref<1x32xf32, #tpu.memory_space<vmem>>, %arg12: memref<32x128xbf16, #tpu.memory_space<vmem>>, %arg13: memref<1x128xf32, #tpu.memory_space<vmem>>, %arg14: memref<128x32xbf16, #tpu.memory_space<vmem>>, %arg15: memref<1x32xf32, #tpu.memory_space<vmem>>, %arg16: memref<1x32xf32, #tpu.memory_space<vmem>>, %arg17: memref<1x32xf32, #tpu.memory_space<vmem>>, %arg18: memref<32x128xbf16, #tpu.memory_space<vmem>>, %arg19: memref<1x128xf32, #tpu.memory_space<vmem>>, %arg20: memref<32x32xf32, #tpu.memory_space<vmem>>, %arg21: memref<32x128xf32, #tpu.memory_space<vmem>>) attributes {dimension_semantics = [], scalar_prefetch = 0 : i64, scratch_operands = 0 : i64, tpu.core_type = #tpu.core_type<tc>} {
    %c0 = arith.constant 0 : index
    %c0_0 = arith.constant 0 : index
    %0 = vector.load %arg0[%c0, %c0_0] : memref<32x32xf32, #tpu.memory_space<vmem>>, vector<32x32xf32>
    %1 = arith.truncf %0 : vector<32x32xf32> to vector<32x32xbf16>
    %c0_1 = arith.constant 0 : index
    %c0_2 = arith.constant 0 : index
    %2 = vector.load %arg2[%c0_1, %c0_2] : memref<32x32xbf16, #tpu.memory_space<vmem>>, vector<32x32xbf16>
    %cst = arith.constant dense<0.000000e+00> : vector<32x32xf32>
    %3 = tpu.matmul %1, %2, %cst {dimension_numbers = #tpu.dot_dimension_numbers<[1], [0], [0], [1], [0, 0, 1, 1], [], []>} : vector<32x32xbf16>, vector<32x32xbf16>, vector<32x32xf32> -> vector<32x32xf32>
    %c0_3 = arith.constant 0 : index
    %c0_4 = arith.constant 0 : index
    %4 = vector.load %arg3[%c0_3, %c0_4] : memref<1x32xf32, #tpu.memory_space<vmem>>, vector<1x32xf32>
    %5 = vector.broadcast %4 : vector<1x32xf32> to vector<32x32xf32>
    %6 = arith.addf %3, %5 : vector<32x32xf32>
    %c0_5 = arith.constant 0 : index
    %c0_6 = arith.constant 0 : index
    %7 = vector.load %arg4[%c0_5, %c0_6] : memref<32x32xbf16, #tpu.memory_space<vmem>>, vector<32x32xbf16>
    %cst_7 = arith.constant dense<0.000000e+00> : vector<32x32xf32>
    %8 = tpu.matmul %1, %7, %cst_7 {dimension_numbers = #tpu.dot_dimension_numbers<[1], [0], [0], [1], [0, 0, 1, 1], [], []>} : vector<32x32xbf16>, vector<32x32xbf16>, vector<32x32xf32> -> vector<32x32xf32>
    %c0_8 = arith.constant 0 : index
    %c0_9 = arith.constant 0 : index
    %9 = vector.load %arg5[%c0_8, %c0_9] : memref<1x32xf32, #tpu.memory_space<vmem>>, vector<1x32xf32>
    %10 = vector.broadcast %9 : vector<1x32xf32> to vector<32x32xf32>
    %11 = arith.addf %8, %10 : vector<32x32xf32>
    %c0_10 = arith.constant 0 : index
    %c0_11 = arith.constant 0 : index
    %12 = vector.load %arg6[%c0_10, %c0_11] : memref<32x32xbf16, #tpu.memory_space<vmem>>, vector<32x32xbf16>
    %cst_12 = arith.constant dense<0.000000e+00> : vector<32x32xf32>
    %13 = tpu.matmul %1, %12, %cst_12 {dimension_numbers = #tpu.dot_dimension_numbers<[1], [0], [0], [1], [0, 0, 1, 1], [], []>} : vector<32x32xbf16>, vector<32x32xbf16>, vector<32x32xf32> -> vector<32x32xf32>
    %c0_13 = arith.constant 0 : index
    %c0_14 = arith.constant 0 : index
    %14 = vector.load %arg7[%c0_13, %c0_14] : memref<1x32xf32, #tpu.memory_space<vmem>>, vector<1x32xf32>
    %15 = vector.broadcast %14 : vector<1x32xf32> to vector<32x32xf32>
    %16 = arith.addf %13, %15 : vector<32x32xf32>
    %17 = vector.shape_cast %6 : vector<32x32xf32> to vector<4x8x32xf32>
    %18 = vector.shape_cast %11 : vector<32x32xf32> to vector<4x8x32xf32>
    %19 = vector.shape_cast %16 : vector<32x32xf32> to vector<4x8x32xf32>
    "tpu.trace_start"() <{level = 10 : i32, message = "bqd,bkd->bqk"}> : () -> ()
    %cst_15 = arith.constant dense<0.000000e+00> : vector<4x8x8xf32>
    %20 = tpu.matmul %17, %18, %cst_15 {dimension_numbers = #tpu.dot_dimension_numbers<[2], [2], [1], [1], [0, 0, 0, 1, 1, 1], [0], [0]>} : vector<4x8x32xf32>, vector<4x8x32xf32>, vector<4x8x8xf32> -> vector<4x8x8xf32>
    "tpu.trace_stop"() : () -> ()
    %c0_16 = arith.constant 0 : index
    %c0_17 = arith.constant 0 : index
    %c0_18 = arith.constant 0 : index
    %21 = vector.load %arg1[%c0_16, %c0_17, %c0_18] : memref<4x1x8xf32, #tpu.memory_space<vmem>>, vector<4x1x8xf32>
    %22 = vector.broadcast %21 : vector<4x1x8xf32> to vector<4x8x8xf32>
    %23 = arith.addf %20, %22 : vector<4x8x8xf32>
    %cst_19 = arith.constant dense<0xFF800000> : vector<4x8xf32>
    %24 = vector.multi_reduction <maximumf>, %23, %cst_19 [2] : vector<4x8x8xf32> to vector<4x8xf32>
    %25 = vector.shape_cast %24 : vector<4x8xf32> to vector<4x8x1xf32>
    %26 = vector.broadcast %25 : vector<4x8x1xf32> to vector<4x8x8xf32>
    %27 = arith.subf %23, %26 : vector<4x8x8xf32>
    %28 = math.exp %27 : vector<4x8x8xf32>
    %cst_20 = arith.constant dense<0.000000e+00> : vector<4x8xf32>
    %29 = vector.multi_reduction <add>, %28, %cst_20 [2] : vector<4x8x8xf32> to vector<4x8xf32>
    %30 = vector.shape_cast %29 : vector<4x8xf32> to vector<4x8x1xf32>
    %31 = tpu.reciprocal %30 {approx = true} : vector<4x8x1xf32> -> vector<4x8x1xf32>
    %32 = vector.broadcast %31 : vector<4x8x1xf32> to vector<4x8x8xf32>
    %33 = arith.mulf %28, %32 : vector<4x8x8xf32>
    "tpu.trace_start"() <{level = 10 : i32, message = "bqk,bkd->bqd"}> : () -> ()
    %cst_21 = arith.constant dense<0.000000e+00> : vector<4x8x32xf32>
    %34 = tpu.matmul %33, %19, %cst_21 {dimension_numbers = #tpu.dot_dimension_numbers<[2], [1], [1], [2], [0, 0, 0, 1, 1, 2], [0], [0]>} : vector<4x8x8xf32>, vector<4x8x32xf32>, vector<4x8x32xf32> -> vector<4x8x32xf32>
    "tpu.trace_stop"() : () -> ()
    %35 = vector.shape_cast %34 : vector<4x8x32xf32> to vector<32x32xf32>
    %36 = arith.truncf %35 : vector<32x32xf32> to vector<32x32xbf16>
    %c0_22 = arith.constant 0 : index
    %c0_23 = arith.constant 0 : index
    %37 = vector.load %arg8[%c0_22, %c0_23] : memref<32x32xbf16, #tpu.memory_space<vmem>>, vector<32x32xbf16>
    %cst_24 = arith.constant dense<0.000000e+00> : vector<32x32xf32>
    %38 = tpu.matmul %36, %37, %cst_24 {dimension_numbers = #tpu.dot_dimension_numbers<[1], [0], [0], [1], [0, 0, 1, 1], [], []>} : vector<32x32xbf16>, vector<32x32xbf16>, vector<32x32xf32> -> vector<32x32xf32>
    %c0_25 = arith.constant 0 : index
    %c0_26 = arith.constant 0 : index
    %39 = vector.load %arg9[%c0_25, %c0_26] : memref<1x32xf32, #tpu.memory_space<vmem>>, vector<1x32xf32>
    %40 = vector.broadcast %39 : vector<1x32xf32> to vector<32x32xf32>
    %41 = arith.addf %38, %40 : vector<32x32xf32>
    %42 = arith.addf %0, %41 : vector<32x32xf32>
    %c0_27 = arith.constant 0 : index
    %c0_28 = arith.constant 0 : index
    %43 = vector.load %arg10[%c0_27, %c0_28] : memref<1x32xf32, #tpu.memory_space<vmem>>, vector<1x32xf32>
    %c0_29 = arith.constant 0 : index
    %c0_30 = arith.constant 0 : index
    %44 = vector.load %arg11[%c0_29, %c0_30] : memref<1x32xf32, #tpu.memory_space<vmem>>, vector<1x32xf32>
    %cst_31 = arith.constant dense<0.000000e+00> : vector<32xf32>
    %45 = vector.multi_reduction <add>, %42, %cst_31 [1] : vector<32x32xf32> to vector<32xf32>
    %46 = vector.shape_cast %45 : vector<32xf32> to vector<32x1xf32>
    %cst_32 = arith.constant 3.200000e+01 : f32
    %47 = vector.broadcast %cst_32 : f32 to vector<32x1xf32>
    %48 = arith.divf %46, %47 : vector<32x1xf32>
    %49 = vector.broadcast %48 : vector<32x1xf32> to vector<32x32xf32>
    %50 = arith.subf %42, %49 : vector<32x32xf32>
    %51 = arith.mulf %50, %50 : vector<32x32xf32>
    %cst_33 = arith.constant dense<0.000000e+00> : vector<32xf32>
    %52 = vector.multi_reduction <add>, %51, %cst_33 [1] : vector<32x32xf32> to vector<32xf32>
    %53 = vector.shape_cast %52 : vector<32xf32> to vector<32x1xf32>
    %cst_34 = arith.constant 3.200000e+01 : f32
    %54 = vector.broadcast %cst_34 : f32 to vector<32x1xf32>
    %55 = arith.divf %53, %54 : vector<32x1xf32>
    %56 = vector.broadcast %48 : vector<32x1xf32> to vector<32x32xf32>
    %57 = arith.subf %42, %56 : vector<32x32xf32>
    %cst_35 = arith.constant 9.99999996E-13 : f32
    %58 = vector.broadcast %cst_35 : f32 to vector<32x1xf32>
    %59 = arith.addf %55, %58 : vector<32x1xf32>
    %60 = math.rsqrt %59 : vector<32x1xf32>
    %61 = vector.broadcast %60 : vector<32x1xf32> to vector<32x32xf32>
    %62 = arith.mulf %57, %61 : vector<32x32xf32>
    %63 = vector.broadcast %43 : vector<1x32xf32> to vector<32x32xf32>
    %64 = arith.mulf %62, %63 : vector<32x32xf32>
    %65 = vector.broadcast %44 : vector<1x32xf32> to vector<32x32xf32>
    %66 = arith.addf %64, %65 : vector<32x32xf32>
    %67 = arith.truncf %66 : vector<32x32xf32> to vector<32x32xbf16>
    %c0_36 = arith.constant 0 : index
    %c0_37 = arith.constant 0 : index
    %68 = vector.load %arg12[%c0_36, %c0_37] : memref<32x128xbf16, #tpu.memory_space<vmem>>, vector<32x128xbf16>
    %cst_38 = arith.constant dense<0.000000e+00> : vector<32x128xf32>
    %69 = tpu.matmul %67, %68, %cst_38 {dimension_numbers = #tpu.dot_dimension_numbers<[1], [0], [0], [1], [0, 0, 1, 1], [], []>} : vector<32x32xbf16>, vector<32x128xbf16>, vector<32x128xf32> -> vector<32x128xf32>
    %c0_39 = arith.constant 0 : index
    %c0_40 = arith.constant 0 : index
    %70 = vector.load %arg13[%c0_39, %c0_40] : memref<1x128xf32, #tpu.memory_space<vmem>>, vector<1x128xf32>
    %71 = vector.broadcast %70 : vector<1x128xf32> to vector<32x128xf32>
    %72 = arith.addf %69, %71 : vector<32x128xf32>
    %73 = arith.mulf %72, %72 : vector<32x128xf32>
    %74 = arith.mulf %72, %73 : vector<32x128xf32>
    %cst_41 = arith.constant 4.471500e-02 : f32
    %75 = vector.broadcast %cst_41 : f32 to vector<32x128xf32>
    %76 = arith.mulf %75, %74 : vector<32x128xf32>
    %77 = arith.addf %72, %76 : vector<32x128xf32>
    %cst_42 = arith.constant 0.797884583 : f32
    %78 = vector.broadcast %cst_42 : f32 to vector<32x128xf32>
    %79 = arith.mulf %78, %77 : vector<32x128xf32>
    %80 = math.tanh %79 : vector<32x128xf32>
    %cst_43 = arith.constant 1.000000e+00 : f32
    %81 = vector.broadcast %cst_43 : f32 to vector<32x128xf32>
    %82 = arith.addf %81, %80 : vector<32x128xf32>
    %cst_44 = arith.constant 5.000000e-01 : f32
    %83 = vector.broadcast %cst_44 : f32 to vector<32x128xf32>
    %84 = arith.mulf %83, %82 : vector<32x128xf32>
    %85 = arith.mulf %72, %84 : vector<32x128xf32>
    %86 = arith.truncf %85 : vector<32x128xf32> to vector<32x128xbf16>
    %c0_45 = arith.constant 0 : index
    %c0_46 = arith.constant 0 : index
    %87 = vector.load %arg14[%c0_45, %c0_46] : memref<128x32xbf16, #tpu.memory_space<vmem>>, vector<128x32xbf16>
    %cst_47 = arith.constant dense<0.000000e+00> : vector<32x32xf32>
    %88 = tpu.matmul %86, %87, %cst_47 {dimension_numbers = #tpu.dot_dimension_numbers<[1], [0], [0], [1], [0, 0, 1, 1], [], []>} : vector<32x128xbf16>, vector<128x32xbf16>, vector<32x32xf32> -> vector<32x32xf32>
    %c0_48 = arith.constant 0 : index
    %c0_49 = arith.constant 0 : index
    %89 = vector.load %arg15[%c0_48, %c0_49] : memref<1x32xf32, #tpu.memory_space<vmem>>, vector<1x32xf32>
    %90 = vector.broadcast %89 : vector<1x32xf32> to vector<32x32xf32>
    %91 = arith.addf %88, %90 : vector<32x32xf32>
    %92 = arith.addf %66, %91 : vector<32x32xf32>
    %c0_50 = arith.constant 0 : index
    %c0_51 = arith.constant 0 : index
    %93 = vector.load %arg16[%c0_50, %c0_51] : memref<1x32xf32, #tpu.memory_space<vmem>>, vector<1x32xf32>
    %c0_52 = arith.constant 0 : index
    %c0_53 = arith.constant 0 : index
    %94 = vector.load %arg17[%c0_52, %c0_53] : memref<1x32xf32, #tpu.memory_space<vmem>>, vector<1x32xf32>
    %cst_54 = arith.constant dense<0.000000e+00> : vector<32xf32>
    %95 = vector.multi_reduction <add>, %92, %cst_54 [1] : vector<32x32xf32> to vector<32xf32>
    %96 = vector.shape_cast %95 : vector<32xf32> to vector<32x1xf32>
    %cst_55 = arith.constant 3.200000e+01 : f32
    %97 = vector.broadcast %cst_55 : f32 to vector<32x1xf32>
    %98 = arith.divf %96, %97 : vector<32x1xf32>
    %99 = vector.broadcast %98 : vector<32x1xf32> to vector<32x32xf32>
    %100 = arith.subf %92, %99 : vector<32x32xf32>
    %101 = arith.mulf %100, %100 : vector<32x32xf32>
    %cst_56 = arith.constant dense<0.000000e+00> : vector<32xf32>
    %102 = vector.multi_reduction <add>, %101, %cst_56 [1] : vector<32x32xf32> to vector<32xf32>
    %103 = vector.shape_cast %102 : vector<32xf32> to vector<32x1xf32>
    %cst_57 = arith.constant 3.200000e+01 : f32
    %104 = vector.broadcast %cst_57 : f32 to vector<32x1xf32>
    %105 = arith.divf %103, %104 : vector<32x1xf32>
    %106 = vector.broadcast %98 : vector<32x1xf32> to vector<32x32xf32>
    %107 = arith.subf %92, %106 : vector<32x32xf32>
    %cst_58 = arith.constant 9.99999996E-13 : f32
    %108 = vector.broadcast %cst_58 : f32 to vector<32x1xf32>
    %109 = arith.addf %105, %108 : vector<32x1xf32>
    %110 = math.rsqrt %109 : vector<32x1xf32>
    %111 = vector.broadcast %110 : vector<32x1xf32> to vector<32x32xf32>
    %112 = arith.mulf %107, %111 : vector<32x32xf32>
    %113 = vector.broadcast %93 : vector<1x32xf32> to vector<32x32xf32>
    %114 = arith.mulf %112, %113 : vector<32x32xf32>
    %115 = vector.broadcast %94 : vector<1x32xf32> to vector<32x32xf32>
    %116 = arith.addf %114, %115 : vector<32x32xf32>
    %c0_59 = arith.constant 0 : index
    %c0_60 = arith.constant 0 : index
    %117 = vector.load %arg20[%c0_59, %c0_60] : memref<32x32xf32, #tpu.memory_space<vmem>>, vector<32x32xf32>
    tpu.vector_store %arg20[%c0_59, %c0_60], %116 {strides = array<i32>} : memref<32x32xf32, #tpu.memory_space<vmem>>, vector<32x32xf32>,
    %118 = arith.truncf %116 : vector<32x32xf32> to vector<32x32xbf16>
    %c0_61 = arith.constant 0 : index
    %c0_62 = arith.constant 0 : index
    %119 = vector.load %arg18[%c0_61, %c0_62] : memref<32x128xbf16, #tpu.memory_space<vmem>>, vector<32x128xbf16>
    %cst_63 = arith.constant dense<0.000000e+00> : vector<32x128xf32>
    %120 = tpu.matmul %118, %119, %cst_63 {dimension_numbers = #tpu.dot_dimension_numbers<[1], [0], [0], [1], [0, 0, 1, 1], [], []>} : vector<32x32xbf16>, vector<32x128xbf16>, vector<32x128xf32> -> vector<32x128xf32>
    %c0_64 = arith.constant 0 : index
    %c0_65 = arith.constant 0 : index
    %121 = vector.load %arg19[%c0_64, %c0_65] : memref<1x128xf32, #tpu.memory_space<vmem>>, vector<1x128xf32>
    %122 = vector.broadcast %121 : vector<1x128xf32> to vector<32x128xf32>
    %123 = arith.addf %120, %122 : vector<32x128xf32>
    %c0_66 = arith.constant 0 : index
    %c0_67 = arith.constant 0 : index
    %124 = vector.load %arg21[%c0_66, %c0_67] : memref<32x128xf32, #tpu.memory_space<vmem>>, vector<32x128xf32>
    tpu.vector_store %arg21[%c0_66, %c0_67], %123 {strides = array<i32>} : memref<32x128xf32, #tpu.memory_space<vmem>>, vector<32x128xf32>,
    return
  }
}

</mosaic_0001>

<bundles_post_ra>
// kernel: tpu_custom_call.1
= control target key start
LH: loop header
LB: loop body
LE: loop exit
PB: predicated region body
PF: predicated region fallthrough
CT: control target
= control target key end

     0   :  { %s2651_s0 = inlined_call_operand.vmem [shape: f32[32,32], index: 0, kind: input, shape index: {}]   ;;  %s2652_s1 = inlined_call_operand.hbm [shape: f32[4,1,8], index: 1, kind: input, shape index: {}]   ;;  %s2653_s2 = inlined_call_operand.vmem [shape: bf16[32,32], index: 2, kind: input, shape index: {}]   ;;  %s2654_s3 = inlined_call_operand.vmem [shape: f32[1,32], index: 3, kind: input, shape index: {}]   ;;  %s2655_s4 = inlined_call_operand.vmem [shape: bf16[32,32], index: 4, kind: input, shape index: {}]   ;;  %s2656_s5 = inlined_call_operand.hbm [shape: f32[1,32], index: 5, kind: input, shape index: {}]   ;;  %s2657_s6 = inlined_call_operand.vmem [shape: bf16[32,32], index: 6, kind: input, shape index: {}]   ;;  %s2658_s7 = inlined_call_operand.hbm [shape: f32[1,32], index: 7, kind: input, shape index: {}]   ;;  %s2659_s8 = inlined_call_operand.hbm [shape: bf16[32,32], index: 8, kind: input, shape index: {}]   ;;  %s2660_s9 = inlined_call_operand.hbm [shape: f32[1,32], index: 9, kind: input, shape index: {}]   ;;  %s2661_s10 = inlined_call_operand.hbm [shape: f32[1,32], index: 10, kind: input, shape index: {}]   ;;  %s2662_s11 = inlined_call_operand.hbm [shape: f32[1,32], index: 11, kind: input, shape index: {}]   ;;  %s2663_s12 = inlined_call_operand.vmem [shape: bf16[32,128], index: 12, kind: input, shape index: {}]   ;;  %s2664_s13 = inlined_call_operand.hbm [shape: f32[1,128], index: 13, kind: input, shape index: {}]   ;;  %s2665_s14 = inlined_call_operand.vmem [shape: bf16[128,32], index: 14, kind: input, shape index: {}]   ;;  %s2666_s15 = inlined_call_operand.vmem [shape: f32[1,32], index: 15, kind: input, shape index: {}]   ;;  %s2667_s16 = inlined_call_operand.vmem [shape: f32[1,32], index: 16, kind: input, shape index: {}]   ;;  %s2668_s17 = inlined_call_operand.vmem [shape: f32[1,32], index: 17, kind: input, shape index: {}]   ;;  %s2669_s18 = inlined_call_operand.vmem [shape: bf16[32,128], index: 18, kind: input, shape index: {}]   ;;  %s2670_s19 = inlined_call_operand.vmem [shape: f32[1,128], index: 19, kind: input, shape index: {}]   ;;  %s2671_s20 = inlined_call_operand.hbm [shape: f32[32,32], index: 20, kind: output, shape index: {0}]   ;;  %s2672_s21 = inlined_call_operand.hbm [shape: f32[32,128], index: 21, kind: output, shape index: {1}]  }
   0x1   :  { %2679 = sst [smem:[#allocation26_spill]] %s2651_s0 }
   0x2   :  { %2680 = sst [smem:[#allocation27_spill]] %s2652_s1 }
   0x3   :  { %2681 = sst [smem:[#allocation28_spill]] %s2653_s2 }
   0x4   :  { %2682 = sst [smem:[#allocation29_spill]] %s2654_s3 }
   0x5   :  { %2683 = sst [smem:[#allocation30_spill]] %s2655_s4 }
   0x6   :  { %2684 = sst [smem:[#allocation31_spill]] %s2656_s5 }
   0x7   :  { %2685 = sst [smem:[#allocation32_spill]] %s2672_s21 }
   0x8   :  { %27 = vsyncpa [#allocation3], 0 }
   0x9   :  { %28 = vsyncpa [#allocation6], 0 }
   0xa   :  { %29 = vsyncpa [#allocation9], 0 }
   0xb   :  { %30 = vsyncpa [#allocation12], 0 }
   0xc   :  { %31 = vsyncpa [#allocation15], 0 }
   0xd   :  { %32 = vsyncpa [#allocation4], 0 }
   0xe   :  { %33 = vsyncpa [#allocation18], 0  ;;  %s2194_s2 = smov [#allocation5]   ;;  %s2195_s26 = smov [#allocation8]  }
   0xf   :  { %s60_s25 = sshll.u32 %s2194_s2, 4  ;;  %s81_s27 = sshll.u32 %s2195_s26, 4  ;;  %s61_s25 = int_to_ptr.vmem [resolvable:$true] %s60_s25  ;;  %s2322_s27 = int_to_ptr.vmem [resolvable:$true] %s81_s27 }
  0x10   :  { %s2686_s29 = sld [smem:[#allocation31_spill]] }
  0x16   :  { %s1960_s0 = scalar_lea.hbm %s2686_s29, 16 }
  0x17   :  { %p1961_p0 = scmp.ne.s32.totalorder %s2686_s29, %s1960_s0  ;;  %p1964_p1 = scmp.lt.u32.totalorder %s1960_s0, %s2686_s29 }
  0x19   :  { %p1966_p2 = pnand %p1964_p1, %p1961_p0 }
  0x1b   :  { %1969 = shalt.err (!%p1966_p2)
}
  0x1c   :  { %s1970_s23 = scalar_lea.vmem %s61_s25, 16  ;;  %s1974_s1 = scalar_lea.vmem %s61_s25, 32 }
  0x1d   :  { %p1971_p3 = scmp.ne.s32.totalorder %s61_s25, %s1970_s23  ;;  %p1975_p4 = scmp.lt.s32.totalorder %s61_s25, %s61_s25 }
  0x1e   :  { %p1976_p5 = scmp.lt.s32.totalorder %s1974_s1, %s1970_s23 }
  0x20   :  { %p1977_p6 = por %p1976_p5, %p1975_p4 }
  0x22   :  { %p1978_p7 = pnand %p1977_p6, %p1971_p3 }
  0x24   :  { %1981 = shalt.err (!%p1978_p7)
}
  0x25   :  { %63 = dma.hbm_to_vmem [thread:$0]  %s2686_s29, 16, %s61_s25, [#allocation6]  }
  0x26   :  { %s1982_s28 = scalar_lea.hbm %s2659_s8, 256 }
  0x27   :  { %p1983_p8 = scmp.ne.s32.totalorder %s2659_s8, %s1982_s28  ;;  %p1986_p9 = scmp.lt.u32.totalorder %s1982_s28, %s2659_s8 }
  0x29   :  { %p1988_p10 = pnand %p1986_p9, %p1983_p8 }
  0x2b   :  { %1991 = shalt.err (!%p1988_p10)
}
  0x2c   :  { %s1992_s22 = scalar_lea.vmem %s2322_s27, 256  ;;  %p1997_p12 = scmp.lt.s32.totalorder %s2322_s27, %s2322_s27 }
  0x2d   :  { %p1993_p11 = scmp.ne.s32.totalorder %s2322_s27, %s1992_s22  ;;  %p1998_p13 = scmp.lt.s32.totalorder %s1992_s22, %s1992_s22 }
  0x2f   :  { %p1999_p0 = por %p1998_p13, %p1997_p12 }
  0x31   :  { %p2000_p1 = pnand %p1999_p0, %p1993_p11 }
  0x33   :  { %2003 = shalt.err (!%p2000_p1)
}
  0x34   :  { %s2196_s25 = smov 64   ;;  %s2197_s29 = smov 4  }
  0x35   :  { %87 = dma.hbm_to_vmem [thread:$0]  %s2659_s8, 256, %s2322_s27, [#allocation9], %s2196_s25, %s2196_s25, %s2197_s29  }
  0x36   :  { %s2198_s24 = smov [#allocation11]   ;;  %s2199_s26 = smov [#allocation2]  }
  0x37   :  { %s104_s2 = sshll.u32 %s2198_s24, 4  ;;  %s41_s3 = sshll.u32 %s2199_s26, 4  ;;  %s105_s2 = int_to_ptr.vmem [resolvable:$true] %s104_s2  ;;  %s2353_s3 = int_to_ptr.vmem [resolvable:$true] %s41_s3 }
  0x38   :  { %s2004_s0 = scalar_lea.hbm %s2661_s10, 16 }
  0x39   :  { %p2005_p2 = scmp.ne.s32.totalorder %s2661_s10, %s2004_s0  ;;  %p2008_p3 = scmp.lt.u32.totalorder %s2004_s0, %s2661_s10 }
  0x3b   :  { %p2010_p4 = pnand %p2008_p3, %p2005_p2 }
  0x3d   :  { %2013 = shalt.err (!%p2010_p4)
}
  0x3e   :  { %s2014_s8 = scalar_lea.vmem %s105_s2, 16  ;;  %s2018_s27 = scalar_lea.vmem %s105_s2, 32 }
  0x3f   :  { %p2015_p5 = scmp.ne.s32.totalorder %s105_s2, %s2014_s8  ;;  %p2019_p6 = scmp.lt.s32.totalorder %s105_s2, %s105_s2 }
  0x40   :  { %p2020_p7 = scmp.lt.s32.totalorder %s2018_s27, %s2014_s8 }
  0x42   :  { %p2021_p8 = por %p2020_p7, %p2019_p6 }
  0x44   :  { %p2022_p9 = pnand %p2021_p8, %p2015_p5 }
  0x46   :  { %2025 = shalt.err (!%p2022_p9)
}
  0x47   :  { %107 = dma.hbm_to_vmem [thread:$0]  %s2661_s10, 16, %s105_s2, [#allocation12]  }
  0x48   :  { %s2687_s24 = sld [smem:[#allocation27_spill]] }
  0x4e   :  { %s2026_s26 = scalar_lea.hbm %s2687_s24, 64 }
  0x4f   :  { %p2027_p10 = scmp.ne.s32.totalorder %s2687_s24, %s2026_s26  ;;  %p2030_p11 = scmp.lt.u32.totalorder %s2026_s26, %s2687_s24 }
  0x51   :  { %p2032_p12 = pnand %p2030_p11, %p2027_p10 }
  0x53   :  { %2035 = shalt.err (!%p2032_p12)
}
  0x54   :  { %s2036_s30 = scalar_lea.vmem %s2353_s3, 64  ;;  %p2041_p0 = scmp.lt.s32.totalorder %s2353_s3, %s2353_s3 }
  0x55   :  { %p2037_p13 = scmp.ne.s32.totalorder %s2353_s3, %s2036_s30  ;;  %p2042_p1 = scmp.lt.s32.totalorder %s2036_s30, %s2036_s30 }
  0x57   :  { %p2043_p2 = por %p2042_p1, %p2041_p0 }
  0x59   :  { %p2044_p3 = pnand %p2043_p2, %p2037_p13 }
  0x5b   :  { %2047 = shalt.err (!%p2044_p3)
}
  0x5c   :  { %s2200_s10 = smov 16   ;;  %s2201_s2 = smov 1  }
  0x5d   :  { %47 = dma.hbm_to_vmem [thread:$0]  %s2687_s24, 64, %s2353_s3, [#allocation3], %s2200_s10, %s2200_s10, %s2201_s2  }
  0x5e   :  { %s2202_s8 = smov [#allocation7]   ;;  %s2203_s25 = smov [#allocation10]  }
  0x5f   :  { %s72_s27 = sshll.u32 %s2202_s8, 4  ;;  %s94_s29 = sshll.u32 %s2203_s25, 4  ;;  %s73_s27 = int_to_ptr.vmem [resolvable:$true] %s72_s27  ;;  %s95_s29 = int_to_ptr.vmem [resolvable:$true] %s94_s29 }
  0x60   :  { %s2048_s26 = scalar_lea.hbm %s2658_s7, 16 }
  0x61   :  { %p2049_p4 = scmp.ne.s32.totalorder %s2658_s7, %s2048_s26  ;;  %p2052_p5 = scmp.lt.u32.totalorder %s2048_s26, %s2658_s7 }
  0x63   :  { %p2054_p6 = pnand %p2052_p5, %p2049_p4 }
  0x65   :  { %2057 = shalt.err (!%p2054_p6)
}
  0x66   :  { %s2058_s3 = scalar_lea.vmem %s73_s27, 16  ;;  %s2062_s24 = scalar_lea.vmem %s73_s27, 32 }
  0x67   :  { %p2059_p7 = scmp.ne.s32.totalorder %s73_s27, %s2058_s3  ;;  %p2063_p8 = scmp.lt.s32.totalorder %s73_s27, %s73_s27 }
  0x68   :  { %p2064_p9 = scmp.lt.s32.totalorder %s2062_s24, %s2058_s3 }
  0x6a   :  { %p2065_p10 = por %p2064_p9, %p2063_p8 }
  0x6c   :  { %p2066_p11 = pnand %p2065_p10, %p2059_p7 }
  0x6e   :  { %2069 = shalt.err (!%p2066_p11)
}
  0x6f   :  { %75 = dma.hbm_to_vmem [thread:$0]  %s2658_s7, 16, %s73_s27, [#allocation6]  }
  0x70   :  { %s2070_s22 = scalar_lea.hbm %s2660_s9, 16 }
  0x71   :  { %p2071_p12 = scmp.ne.s32.totalorder %s2660_s9, %s2070_s22  ;;  %p2074_p13 = scmp.lt.u32.totalorder %s2070_s22, %s2660_s9 }
  0x73   :  { %p2076_p0 = pnand %p2074_p13, %p2071_p12 }
  0x75   :  { %2079 = shalt.err (!%p2076_p0)
}
  0x76   :  { %s2080_s26 = scalar_lea.vmem %s95_s29, 16  ;;  %s2084_s21 = scalar_lea.vmem %s95_s29, 32 }
  0x77   :  { %p2081_p1 = scmp.ne.s32.totalorder %s95_s29, %s2080_s26  ;;  %p2085_p2 = scmp.lt.s32.totalorder %s95_s29, %s95_s29 }
  0x78   :  { %p2086_p3 = scmp.lt.s32.totalorder %s2084_s21, %s2080_s26 }
  0x7a   :  { %p2087_p4 = por %p2086_p3, %p2085_p2 }
  0x7c   :  { %p2088_p5 = pnand %p2087_p4, %p2081_p1 }
  0x7e   :  { %2091 = shalt.err (!%p2088_p5)
}
  0x7f   :  { %97 = dma.hbm_to_vmem [thread:$0]  %s2660_s9, 16, %s95_s29, [#allocation9]  }
  0x80   :  { %s2204_s28 = smov [#allocation13]   ;;  %s2205_s0 = smov [#allocation14]  }
  0x81   :  { %s114_s4 = sshll.u32 %s2204_s28, 4  ;;  %s126_s3 = sshll.u32 %s2205_s0, 4  ;;  %s115_s4 = int_to_ptr.vmem [resolvable:$true] %s114_s4  ;;  %s127_s3 = int_to_ptr.vmem [resolvable:$true] %s126_s3 }
  0x82   :  { %s2092_s10 = scalar_lea.hbm %s2662_s11, 16 }
  0x83   :  { %p2093_p6 = scmp.ne.s32.totalorder %s2662_s11, %s2092_s10  ;;  %p2096_p7 = scmp.lt.u32.totalorder %s2092_s10, %s2662_s11 }
  0x85   :  { %p2098_p8 = pnand %p2096_p7, %p2093_p6 }
  0x87   :  { %2101 = shalt.err (!%p2098_p8)
}
  0x88   :  { %s2102_s9 = scalar_lea.vmem %s115_s4, 16  ;;  %s2106_s29 = scalar_lea.vmem %s115_s4, 32 }
  0x89   :  { %p2103_p9 = scmp.ne.s32.totalorder %s115_s4, %s2102_s9  ;;  %p2107_p10 = scmp.lt.s32.totalorder %s115_s4, %s115_s4 }
  0x8a   :  { %p2108_p11 = scmp.lt.s32.totalorder %s2106_s29, %s2102_s9 }
  0x8c   :  { %p2109_p12 = por %p2108_p11, %p2107_p10 }
  0x8e   :  { %p2110_p13 = pnand %p2109_p12, %p2103_p9 }
  0x90   :  { %2113 = shalt.err (!%p2110_p13)
}
  0x91   :  { %117 = dma.hbm_to_vmem [thread:$0]  %s2662_s11, 16, %s115_s4, [#allocation12]  }
  0x92   :  { %s2114_s21 = scalar_lea.hbm %s2664_s13, 16 }
  0x93   :  { %p2115_p0 = scmp.ne.s32.totalorder %s2664_s13, %s2114_s21  ;;  %p2118_p1 = scmp.lt.u32.totalorder %s2114_s21, %s2664_s13 }
  0x95   :  { %p2120_p2 = pnand %p2118_p1, %p2115_p0 }
  0x97   :  { %2123 = shalt.err (!%p2120_p2)
}
  0x98   :  { %s2124_s24 = scalar_lea.vmem %s127_s3, 16  ;;  %s2128_s30 = scalar_lea.vmem %s127_s3, 32 }
  0x99   :  { %p2125_p3 = scmp.ne.s32.totalorder %s127_s3, %s2124_s24  ;;  %p2129_p4 = scmp.lt.s32.totalorder %s127_s3, %s127_s3 }
  0x9a   :  { %p2130_p5 = scmp.lt.s32.totalorder %s2128_s30, %s2124_s24 }
  0x9c   :  { %p2131_p6 = por %p2130_p5, %p2129_p4 }
  0x9e   :  { %p2132_p7 = pnand %p2131_p6, %p2125_p3 }
  0xa0   :  { %2135 = shalt.err (!%p2132_p7)
}
  0xa1   :  { %129 = dma.hbm_to_vmem [thread:$0]  %s2664_s13, 16, %s127_s3, [#allocation15]  }
  0xa2   :  { %2180 = dma.done.wait [#allocation3], 64  }
  0xa3   :  { %2181 = vsyncadd [#allocation3], 4294967232 }
  0xa4   :  { %2182 = dma.done.wait [#allocation6], 32  }
  0xa5   :  { %2183 = vsyncadd [#allocation6], 4294967264 }
  0xa6   :  { %2184 = dma.done.wait [#allocation9], 272  }
  0xa7   :  { %2185 = vsyncadd [#allocation9], 4294967024 }
  0xa8   :  { %2186 = dma.done.wait [#allocation12], 32  }
  0xa9   :  { %2187 = vsyncadd [#allocation12], 4294967264 }
  0xaa   :  { %2188 = dma.done.wait [#allocation15], 16  }
  0xab   :  { %2189 = vsyncadd [#allocation15], 4294967280  ;;  %s2688_s5 = sld [smem:[#allocation28_spill]]  ;;  %s2689_s9 = sld [smem:[#allocation26_spill]]  ;;  %vm196_vm0 = vcmask 261120   ;;  %v2206_v10 = vmov 0.0  }
  0xac   :  { %s2690_s28 = sld [smem:[#allocation30_spill]]  ;;  %vm2207_vm1 = vmmov 0   ;;  %v1670_v15 = vld [vmem:[#allocation5] ss:$0 sm:$0xff]  ;;  %s2691_s4 = sld [smem:[#allocation29_spill]]  ;;  %v1905_v30 = vld [vmem:[%s2657_s6 + $0x8] sm:$0xff]  }
  0xad   :  { %v1904_v29 = vld [vmem:[%s2657_s6] sm:$0xff]   ;;  %vm728_vm2 = vcmask 64512  }
  0xae   :  { %1790 = vmatprep.subr.bf16.mxu0 %v1904_v29  ;;  %v1680_v31 = vld [vmem:[#allocation2] ss:$0 sm:$0xff]  ;;  %v1681_v35 = vld [vmem:[#allocation2 + $0x1] ss:$0 sm:$0xff]  ;;  %v1682_v40 = vld [vmem:[#allocation2 + $0x2] ss:$0 sm:$0xff] }
  0xaf   :  { %1791 = vmatpush3.bf16.msra.mxu0 %v1904_v29  ;;  %v1683_v45 = vld [vmem:[#allocation2 + $0x3] ss:$0 sm:$0xff] }
  0xb0   :  { %1792 = vmatprep.subr.bf16.mxu0 %v1905_v30 }
  0xb1   :  { %v1900_v0 = vld [vmem:[%s2688_s5] sm:$0xff]   ;;  %v1901_v1 = vld [vmem:[%s2688_s5 + $0x8] sm:$0xff]   ;;  %v2451_v4 = vld [vmem:[%s2689_s9 + $0x10] sm:$0xff] }
  0xb2   :  { %1774 = vmatprep.subr.bf16.mxu1 %v1900_v0  ;;  %v2441_v2 = vld [vmem:[%s2689_s9] sm:$0xff]  ;;  %v2446_v3 = vld [vmem:[%s2689_s9 + $0x8] sm:$0xff]  ;;  %v2458_v6 = vld [vmem:[%s2689_s9 + $0x18] sm:$0xff] }
  0xb3   :  { %1775 = vmatpush3.bf16.msra.mxu1 %v1900_v0  ;;  %v171_v5 = vpack.c.bf16 %v2446_v3, %v2441_v2  ;;  %v1902_v7 = vld [vmem:[%s2690_s28] sm:$0xff]   ;;  %v172_v8 = vpack.c.bf16 %v2458_v6, %v2451_v4  ;;  %v1903_v9 = vld [vmem:[%s2690_s28 + $0x8] sm:$0xff]   ;;  %1793 = vmatpush3.bf16.msra.mxu0 %v1905_v30 }
  0xb4   :  { %1776 = vmatprep.subr.bf16.mxu1 %v1901_v1  ;;  %v1665_v18 = vld [vmem:[%s2691_s4] ss:$0 sm:$0xff]  ;;  %1818 = vmatprep.subr.mxu0 %v2206_v10 }
  0xb5   :  { %1778 = vmatprep.mubr.msk.bf16.mxu1 %vm196_vm0, %v171_v5  ;;  %1794 = vmatprep.mubr.msk.bf16.mxu0 %vm196_vm0, %v171_v5 }
  0xb6   :  { %1795 = vmatmul.mubr.msk.bf16.vlgmr.msra.gmra.mrb[0].mxu0 %vm196_vm0, %v172_v8 }
  0xb7   :  { %1777 = vmatpush3.bf16.msra.mxu1 %v1901_v1  ;;  %1820 = vmatprep.mubr.msk.f32.mxu0 %vm2207_vm1, %v2206_v10 }
  0xb8   :  { %1782 = vmatprep.subr.bf16.mxu1 %v1902_v7 }
  0xba   :  { %1779 = vmatmul.mubr.msk.bf16.vlgmr.msra.gmra.mrb[0].mxu1 %vm196_vm0, %v172_v8 }
  0xbb   :  { %1783 = vmatpush3.bf16.msra.mxu1 %v1902_v7  ;;  %1786 = vmatprep.mubr.msk.bf16.mxu1 %vm196_vm0, %v171_v5 }
  0xbc   :  { %1784 = vmatprep.subr.bf16.mxu1 %v1903_v9 }
  0xbf   :  { %1785 = vmatpush3.bf16.msra.mxu1 %v1903_v9 }
  0xc0   :  { %1798 = vmatprep.subr.mxu1 %v2206_v10 }
  0xc2   :  { %1787 = vmatmul.mubr.msk.bf16.vlgmr.msra.gmra.mrb[4].mxu1 %vm196_vm0, %v172_v8 }
  0xc3   :  { %1800 = vmatprep.mubr.msk.f32.mxu1 %vm2207_vm1, %v2206_v10 }
 0x18d   :  { %v1780_v11 = vpop.f32.mrb[0].mxu1 }
 0x18e   :  { %v237_v12 = vpop.f32.mrb[1].mxu1  ;;  %v246_v26 = vadd.f32 %v1780_v11, %v1665_v18 }
 0x18f   :  { %v1781_v13 = vpop.f32.mrb[2].mxu1  ;;  %v238_v22 = vadd.f32 %v1665_v18, %v237_v12  ;;  %v1796_v12 = vpop.f32.mrb[0].mxu0 }
 0x190   :  { %v240_v14 = vpop.f32.mrb[3].mxu1  ;;  %v249_v28 = vadd.f32 %v1781_v13, %v1665_v18  ;;  %v1675_v13 = vld [vmem:[#allocation7] ss:$0 sm:$0xff] }
 0x191   :  { %v241_v24 = vadd.f32 %v1665_v18, %v240_v14  ;;  %v381_v14 = vpop.f32.mrb[1].mxu0 }
 0x195   :  { %v1788_v16 = vpop.f32.mrb[4].mxu1 }
 0x196   :  { %v309_v17 = vpop.f32.mrb[5].mxu1  ;;  %v318_v25 = vadd.f32 %v1788_v16, %v1670_v15  ;;  %v1797_v16 = vpop.f32.mrb[2].mxu0 }
 0x197   :  { %v310_v19 = vadd.f32 %v1670_v15, %v309_v17  ;;  %v1789_v20 = vpop.f32.mrb[6].mxu1  ;;  %v384_v17 = vpop.f32.mrb[3].mxu0 }
 0x198   :  { %v312_v21 = vpop.f32.mrb[7].mxu1  ;;  %v321_v27 = vadd.f32 %v1789_v20, %v1670_v15  ;;  %v385_v18 = vadd.f32 %v1675_v13, %v384_v17  ;;  %v393_v20 = vadd.f32 %v1797_v16, %v1675_v13 }
 0x199   :  { %1799 = vmatpush3.xpose.msk.msra.mxu1 %vm196_vm0, %v310_v19  ;;  %v313_v23 = vadd.f32 %v1670_v15, %v312_v21  ;;  %v382_v15 = vadd.f32 %v1675_v13, %v381_v14  ;;  %v390_v19 = vadd.f32 %v1796_v12, %v1675_v13 }
 0x19a   :  { %1803 = vmatprep.subr.mxu1 %v2206_v10 }
 0x19b   :  { %1819 = vmatpush3.msra.mxu0 %v382_v15 }
 0x19c   :  { %1801 = vmatmul.mubr.msk.f32.vlgmr.msra.gmra.mrb[8].mxu1 %vm196_vm0, %v238_v22  ;;  %1828 = vmatprep.subr.mxu0 %v2206_v10 }
 0x19d   :  { %1804 = vmatpush3.xpose.msk.msra.mxu1 %vm196_vm0, %v313_v23  ;;  %1805 = vmatprep.mubr.msk.f32.mxu1 %vm2207_vm1, %v2206_v10 }
 0x19e   :  { %1808 = vmatprep.subr.mxu1 %v2206_v10 }
 0x1a0   :  { %1806 = vmatmul.mubr.msk.f32.vlgmr.msra.gmra.mrb[10].mxu1 %vm196_vm0, %v241_v24 }
 0x1a1   :  { %1809 = vmatpush3.xpose.msk.msra.mxu1 %vm196_vm0, %v318_v25  ;;  %1810 = vmatprep.mubr.msk.f32.mxu1 %vm2207_vm1, %v2206_v10 }
 0x1a2   :  { %1813 = vmatprep.subr.mxu1 %v2206_v10 }
 0x1a4   :  { %1811 = vmatmul.mubr.msk.f32.vlgmr.msra.gmra.mrb[12].mxu1 %vm196_vm0, %v246_v26 }
 0x1a5   :  { %1814 = vmatpush3.xpose.msk.msra.mxu1 %vm196_vm0, %v321_v27  ;;  %1815 = vmatprep.mubr.msk.f32.mxu1 %vm2207_vm1, %v2206_v10 }
 0x1a6   :  { %1823 = vmatprep.subr.mxu1 %v2206_v10 }
 0x1a8   :  { %1816 = vmatmul.mubr.msk.f32.vlgmr.msra.gmra.mrb[14].mxu1 %vm196_vm0, %v249_v28 }
 0x1a9   :  { %1825 = vmatprep.mubr.msk.f32.mxu1 %vm2207_vm1, %v2206_v10  ;;  %1824 = vmatpush3.msra.mxu1 %v385_v18  ;;  %v1908_v18 = vld [vmem:[%s2663_s12] sm:$0xff]  }
 0x1aa   :  { %1833 = vmatprep.subr.mxu1 %v2206_v10 }
 0x26f   :  { %v496_v32 = vpop.f32.mrb[8].mxu1 }
 0x270   :  { %v497_v33 = vadd.f32 %v1680_v31, %v496_v32  ;;  %v1802_v34 = vpop.f32.mrb[9].mxu1 }
 0x271   :  { %v1907_v34 = vld [vmem:[#allocation8 + $0x8] sm:$0xff]  }
 0x272   :  { %v729_v36 = vsel %vm728_vm2, %v497_v33, -inf }
 0x273   :  { %730 = vmax.xlane.f32.xlu0 %v729_v36  ;;  %v572_v37 = vpop.f32.mrb[10].mxu1 }
 0x274   :  { %v573_v38 = vadd.f32 %v1681_v35, %v572_v37  ;;  %v1807_v39 = vpop.f32.mrb[11].mxu1 }
 0x276   :  { %v732_v41 = vsel %vm728_vm2, %v573_v38, -inf }
 0x277   :  { %733 = vmax.xlane.f32.xlu0 %v732_v41  ;;  %v648_v42 = vpop.f32.mrb[12].mxu1 }
 0x278   :  { %v649_v43 = vadd.f32 %v1682_v40, %v648_v42  ;;  %v1812_v44 = vpop.f32.mrb[13].mxu1 }
 0x279   :  { %v1696_v44 = vld [vmem:[#allocation10] ss:$0 sm:$0xff] }
 0x27a   :  { %v735_v46 = vsel %vm728_vm2, %v649_v43, -inf }
 0x27b   :  { %736 = vmax.xlane.f32.xlu1 %v735_v46  ;;  %v724_v47 = vpop.f32.mrb[14].mxu1 }
 0x27c   :  { %v725_v48 = vadd.f32 %v1683_v45, %v724_v47  ;;  %v1817_v49 = vpop.f32.mrb[15].mxu1 }
 0x27e   :  { %v738_v50 = vsel %vm728_vm2, %v725_v48, -inf }
 0x27f   :  { %739 = vmax.xlane.f32.xlu1 %v738_v50 }
 0x300   :  { %v731_v51 = vpop.xlane.xlu0 %730 }
 0x301   :  { %v741_v52 = vsub.f32 %v497_v33, %v731_v51  ;;  %v1906_v33 = vld [vmem:[#allocation8] sm:$0xff]  }
 0x303   :  { %v745_v53 = vmul.f32 1.442695, %v741_v52 }
 0x304   :  { %v734_v54 = vpop.xlane.xlu0 %733 }
 0x305   :  { %1920 = vpow2.f32 %v745_v53  ;;  %v742_v55 = vsub.f32 %v573_v38, %v734_v54 }
 0x307   :  { %v747_v56 = vmul.f32 1.442695, %v742_v55 }
 0x308   :  { %v737_v57 = vpop.xlane.xlu1 %736 }
 0x309   :  { %1922 = vpow2.f32 %v747_v56  ;;  %v743_v58 = vsub.f32 %v649_v43, %v737_v57 }
 0x30b   :  { %v749_v59 = vmul.f32 1.442695, %v743_v58 }
 0x30c   :  { %v740_v60 = vpop.xlane.xlu1 %739 }
 0x30d   :  { %1924 = vpow2.f32 %v749_v59  ;;  %v744_v61 = vsub.f32 %v725_v48, %v740_v60 }
 0x30f   :  { %v1921_v62 = vpop.eup %1920  ;;  %v751_v63 = vmul.f32 1.442695, %v744_v61 }
 0x310   :  { %v753_v0 = vsel %vm728_vm2, %v1921_v62, 0.0 }
 0x311   :  { %1926 = vpow2.f32 %v751_v63  ;;  %754 = vadd.xlane.f32.xlu0 %v753_v0 }
 0x313   :  { %v1923_v1 = vpop.eup %1922 }
 0x314   :  { %v756_v5 = vsel %vm728_vm2, %v1923_v1, 0.0 }
 0x315   :  { %757 = vadd.xlane.f32.xlu1 %v756_v5 }
 0x317   :  { %v1925_v7 = vpop.eup %1924 }
 0x318   :  { %v759_v8 = vsel %vm728_vm2, %v1925_v7, 0.0 }
 0x319   :  { %760 = vadd.xlane.f32.xlu0 %v759_v8 }
 0x31b   :  { %v1927_v9 = vpop.eup %1926 }
 0x31c   :  { %v762_v11 = vsel %vm728_vm2, %v1927_v9, 0.0 }
 0x31d   :  { %763 = vadd.xlane.f32.xlu1 %v762_v11 }
 0x39e   :  { %v755_v21 = vpop.xlane.xlu0 %754 }
 0x39f   :  { %1928 = vrcp.f32 %v755_v21 }
 0x3a2   :  { %v758_v22 = vpop.xlane.xlu1 %757 }
 0x3a3   :  { %1930 = vrcp.f32 %v758_v22 }
 0x3a6   :  { %v761_v23 = vpop.xlane.xlu0 %760 }
 0x3a7   :  { %1932 = vrcp.f32 %v761_v23 }
 0x3a9   :  { %v1929_v24 = vpop.eup %1928 }
 0x3aa   :  { %v769_v25 = vmul.f32 %v1929_v24, %v1921_v62  ;;  %v764_v26 = vpop.xlane.xlu1 %763 }
 0x3ab   :  { %1934 = vrcp.f32 %v764_v26 }
 0x3ac   :  { %1821 = vmatmul.mubr.msk.f32.vlgmr.msra.gmra.mrb[4].mxu0 %vm728_vm2, %v769_v25 }
 0x3ad   :  { %v1931_v27 = vpop.eup %1930  ;;  %1829 = vmatpush3.msra.mxu0 %v390_v19  ;;  %1830 = vmatprep.mubr.msk.f32.mxu0 %vm2207_vm1, %v2206_v10  ;;  %v1909_v19 = vld [vmem:[%s2663_s12 + $0x8] sm:$0xff]  }
 0x3ae   :  { %v770_v28 = vmul.f32 %v1931_v27, %v1923_v1  ;;  %1838 = vmatprep.subr.bf16.mxu0 %v1906_v33 }
 0x3b0   :  { %1826 = vmatmul.mubr.msk.f32.vlgmr.msra.gmra.mrb[16].mxu1 %vm728_vm2, %v770_v28 }
 0x3b1   :  { %v1933_v29 = vpop.eup %1932  ;;  %1834 = vmatpush3.msra.mxu1 %v393_v20  ;;  %1835 = vmatprep.mubr.msk.f32.mxu1 %vm2207_vm1, %v2206_v10 }
 0x3b2   :  { %v771_v30 = vmul.f32 %v1933_v29, %v1925_v7  ;;  %1846 = vmatprep.subr.bf16.mxu1 %v1908_v18 }
 0x3b4   :  { %1831 = vmatmul.mubr.msk.f32.vlgmr.msra.gmra.mrb[6].mxu0 %vm728_vm2, %v771_v30 }
 0x3b5   :  { %v1935_v31 = vpop.eup %1934  ;;  %1839 = vmatpush3.bf16.msra.mxu0 %v1906_v33  ;;  %v1701_v33 = vld [vmem:[#allocation11] ss:$0 sm:$0xff] }
 0x3b6   :  { %v772_v32 = vmul.f32 %v1935_v31, %v1927_v9  ;;  %1840 = vmatprep.subr.bf16.mxu0 %v1907_v34 }
 0x3b8   :  { %1836 = vmatmul.mubr.msk.f32.vlgmr.msra.gmra.mrb[18].mxu1 %vm728_vm2, %v772_v32 }
 0x3b9   :  { %1841 = vmatpush3.bf16.msra.mxu0 %v1907_v34  ;;  %1847 = vmatpush3.bf16.msra.mxu1 %v1908_v18 }
 0x3ba   :  { %1848 = vmatprep.subr.bf16.mxu1 %v1909_v19 }
 0x3bd   :  { %1849 = vmatpush3.bf16.msra.mxu1 %v1909_v19 }
 0x47f   :  { %v842_v35 = vpop.f32.mrb[4].mxu0 }
 0x480   :  { %v1822_v36 = vpop.f32.mrb[5].mxu0 }
 0x483   :  { %v915_v37 = vpop.f32.mrb[16].mxu1 }
 0x484   :  { %v1065_v38 = vpack.c.bf16 %v915_v37, %v842_v35  ;;  %v1827_v39 = vpop.f32.mrb[17].mxu1 }
 0x485   :  { %v1702_v39 = vld [vmem:[#allocation13] ss:$0 sm:$0xff] }
 0x486   :  { %1842 = vmatprep.mubr.msk.bf16.mxu0 %vm196_vm0, %v1065_v38 }
 0x487   :  { %v988_v10 = vpop.f32.mrb[6].mxu0 }
 0x488   :  { %v1832_v40 = vpop.f32.mrb[7].mxu0 }
 0x48b   :  { %v1061_v41 = vpop.f32.mrb[18].mxu1 }
 0x48c   :  { %v1066_v42 = vpack.c.bf16 %v1061_v41, %v988_v10  ;;  %v1837_v43 = vpop.f32.mrb[19].mxu1 }
 0x48e   :  { %1843 = vmatmul.mubr.msk.bf16.vlgmr.msra.gmra.mrb[8].mxu0 %vm196_vm0, %v1066_v42 }
 0x561   :  { %v1844_v45 = vpop.f32.mrb[8].mxu0 }
 0x562   :  { %v1130_v46 = vpop.f32.mrb[9].mxu0  ;;  %v1139_v47 = vadd.f32 %v1844_v45, %v1696_v44 }
 0x563   :  { %v1131_v48 = vadd.f32 %v1696_v44, %v1130_v46  ;;  %v1845_v49 = vpop.f32.mrb[10].mxu0 }
 0x564   :  { %v1133_v50 = vpop.f32.mrb[11].mxu0  ;;  %v1142_v51 = vadd.f32 %v1845_v49, %v1696_v44  ;;  %v1147_v56 = vadd.f32 %v1139_v47, %v2451_v4 }
 0x565   :  { %v1134_v52 = vadd.f32 %v1696_v44, %v1133_v50  ;;  %v1145_v53 = vadd.f32 %v1131_v48, %v2441_v2 }
 0x566   :  { %v1148_v58 = vadd.f32 %v1142_v51, %v2458_v6  ;;  %v1157_v59 = vsel %vm196_vm0, %v1147_v56, 0.0  ;;  %v1910_v51 = vld [vmem:[%s2665_s14] sm:$0xff]  }
 0x567   :  { %v1151_v54 = vsel %vm196_vm0, %v1145_v53, 0.0  ;;  %v1146_v55 = vadd.f32 %v1134_v52, %v2446_v3  ;;  %1854 = vmatprep.subr.bf16.mxu0 %v1910_v51  ;;  %v1911_v52 = vld [vmem:[%s2665_s14 + $0x8] sm:$0xff]  }
 0x568   :  { %1152 = vadd.xlane.f32.xlu0 %v1151_v54  ;;  %v1160_v60 = vsel %vm196_vm0, %v1148_v58, 0.0  ;;  %1855 = vmatpush3.bf16.msra.mxu0 %v1910_v51  ;;  %v1913_v54 = vld [vmem:[%s2665_s14 + $0x18] sm:$0xff]  }
 0x569   :  { %v1154_v57 = vsel %vm196_vm0, %v1146_v55, 0.0  ;;  %1856 = vmatprep.subr.bf16.mxu0 %v1911_v52 }
 0x56a   :  { %1155 = vadd.xlane.f32.xlu1 %v1154_v57  ;;  %v1916_v57 = vld [vmem:[%s2665_s14 + $0x30] sm:$0xff]  }
 0x56c   :  { %1158 = vadd.xlane.f32.xlu0 %v1157_v59  ;;  %1857 = vmatpush3.bf16.msra.mxu0 %v1911_v52  ;;  %v1703_v59 = vld [vmem:[#allocation14] ss:$0 sm:$0xff] }
 0x56e   :  { %1161 = vadd.xlane.f32.xlu1 %v1160_v60 }
 0x5f5   :  { %v1153_v61 = vpop.xlane.xlu0 %1152 }
 0x5f6   :  { %v1164_v2 = vmul.f32 0.03125, %v1153_v61 }
 0x5f7   :  { %v1156_v62 = vpop.xlane.xlu1 %1155 }
 0x5f8   :  { %v1168_v63 = vsub.f32 %v1145_v53, %v1164_v2  ;;  %v1165_v0 = vmul.f32 0.03125, %v1156_v62  ;;  %v1912_v53 = vld [vmem:[%s2665_s14 + $0x10] sm:$0xff]  }
 0x5f9   :  { %v1159_v3 = vpop.xlane.xlu0 %1158  ;;  %1858 = vmatprep.subr.bf16.mxu0 %v1912_v53 }
 0x5fa   :  { %v1169_v1 = vsub.f32 %v1146_v55, %v1165_v0  ;;  %v1166_v4 = vmul.f32 0.03125, %v1159_v3  ;;  %v1172_v5 = vmul.f32 %v1168_v63, %v1168_v63  ;;  %1859 = vmatpush3.bf16.msra.mxu0 %v1912_v53  ;;  %v1914_v55 = vld [vmem:[%s2665_s14 + $0x20] sm:$0xff]  }
 0x5fb   :  { %v1162_v7 = vpop.xlane.xlu1 %1161  ;;  %1860 = vmatprep.subr.bf16.mxu0 %v1913_v54 }
 0x5fc   :  { %v1170_v8 = vsub.f32 %v1147_v56, %v1166_v4  ;;  %v1167_v9 = vmul.f32 0.03125, %v1162_v7  ;;  %v1176_v6 = vsel %vm196_vm0, %v1172_v5, 0.0  ;;  %v1173_v11 = vmul.f32 %v1169_v1, %v1169_v1  ;;  %v1915_v56 = vld [vmem:[%s2665_s14 + $0x28] sm:$0xff]  }
 0x5fd   :  { %1177 = vadd.xlane.f32.xlu0 %v1176_v6 }
 0x5fe   :  { %v1171_v12 = vsub.f32 %v1148_v58, %v1167_v9  ;;  %v1179_v13 = vsel %vm196_vm0, %v1173_v11, 0.0  ;;  %v1174_v14 = vmul.f32 %v1170_v8, %v1170_v8  ;;  %1861 = vmatpush3.bf16.msra.mxu0 %v1913_v54  ;;  %v1917_v58 = vld [vmem:[%s2665_s14 + $0x38] sm:$0xff]  }
 0x5ff   :  { %1180 = vadd.xlane.f32.xlu1 %v1179_v13  ;;  %1862 = vmatprep.subr.bf16.mxu0 %v1914_v55 }
 0x600   :  { %v1182_v15 = vsel %vm196_vm0, %v1174_v14, 0.0  ;;  %v1175_v16 = vmul.f32 %v1171_v12, %v1171_v12 }
 0x601   :  { %1183 = vadd.xlane.f32.xlu0 %v1182_v15 }
 0x602   :  { %v1185_v17 = vsel %vm196_vm0, %v1175_v16, 0.0  ;;  %1863 = vmatpush3.bf16.msra.mxu0 %v1914_v55 }
 0x603   :  { %1186 = vadd.xlane.f32.xlu1 %v1185_v17  ;;  %1864 = vmatprep.subr.bf16.mxu0 %v1915_v56 }
 0x606   :  { %1865 = vmatpush3.bf16.msra.mxu0 %v1915_v56 }
 0x607   :  { %1866 = vmatprep.subr.bf16.mxu0 %v1916_v57 }
 0x60a   :  { %1867 = vmatpush3.bf16.msra.mxu0 %v1916_v57 }
 0x60b   :  { %1868 = vmatprep.subr.bf16.mxu0 %v1917_v58 }
 0x60e   :  { %1869 = vmatpush3.bf16.msra.mxu0 %v1917_v58 }
 0x68a   :  { %v1178_v20 = vpop.xlane.xlu0 %1177 }
 0x68b   :  { %v1188_v21 = vmul.f32 0.03125, %v1178_v20 }
 0x68c   :  { %v1181_v22 = vpop.xlane.xlu1 %1180 }
 0x68d   :  { %v1192_v23 = vadd.f32 1e-12, %v1188_v21  ;;  %v1189_v24 = vmul.f32 0.03125, %v1181_v22 }
 0x68e   :  { %v1184_v25 = vpop.xlane.xlu0 %1183 }
 0x68f   :  { %1936 = vrsqrt.f32 %v1192_v23  ;;  %v1193_v26 = vadd.f32 1e-12, %v1189_v24  ;;  %v1190_v27 = vmul.f32 0.03125, %v1184_v25 }
 0x690   :  { %v1187_v28 = vpop.xlane.xlu1 %1186 }
 0x691   :  { %1938 = vrsqrt.f32 %v1193_v26  ;;  %v1194_v29 = vadd.f32 1e-12, %v1190_v27  ;;  %v1191_v30 = vmul.f32 0.03125, %v1187_v28 }
 0x693   :  { %1940 = vrsqrt.f32 %v1194_v29  ;;  %v1195_v31 = vadd.f32 1e-12, %v1191_v30 }
 0x695   :  { %1942 = vrsqrt.f32 %v1195_v31 }
 0x699   :  { %v1937_v32 = vpop.eup %1936 }
 0x69a   :  { %v1200_v34 = vmul.f32 %v1937_v32, %v1168_v63 }
 0x69b   :  { %v1939_v35 = vpop.eup %1938 }
 0x69c   :  { %v1201_v36 = vmul.f32 %v1939_v35, %v1169_v1  ;;  %v1210_v37 = vmul.f32 %v1701_v33, %v1200_v34 }
 0x69d   :  { %v1941_v38 = vpop.eup %1940 }
 0x69e   :  { %v1202_v10 = vmul.f32 %v1941_v38, %v1170_v8  ;;  %v1211_v40 = vmul.f32 %v1701_v33, %v1201_v36  ;;  %v2547_v44 = vadd.f32 %v1702_v39, %v1210_v37 }
 0x69f   :  { %v1943_v41 = vpop.eup %1942 }
 0x6a0   :  { %v1212_v42 = vmul.f32 %v1701_v33, %v1202_v10  ;;  %v1203_v43 = vmul.f32 %v1943_v41, %v1171_v12  ;;  %v2549_v45 = vadd.f32 %v1702_v39, %v1211_v40 }
 0x6a2   :  { %v1213_v46 = vmul.f32 %v1701_v33, %v1203_v43  ;;  %v1224_v47 = vpack.c.bf16 %v2549_v45, %v2547_v44  ;;  %v2554_v48 = vadd.f32 %v1702_v39, %v1212_v42  ;;  %v1708_v42 = vld [vmem:[%s2666_s15] ss:$0 sm:$0xff] }
 0x6a4   :  { %1850 = vmatprep.mubr.msk.bf16.mxu1 %vm196_vm0, %v1224_v47  ;;  %v2556_v49 = vadd.f32 %v1702_v39, %v1213_v46 }
 0x6a6   :  { %v1225_v50 = vpack.c.bf16 %v2556_v49, %v2554_v48 }
 0x6a8   :  { %1851 = vmatmul.mubr.msk.bf16.vlgmr.msra.gmra.mrb[20].mxu1 %vm196_vm0, %v1225_v50 }
 0x77b   :  { %v1852_v60 = vpop.f32.mrb[20].mxu1 }
 0x77c   :  { %v1298_v61 = vadd.f32 %v1852_v60, %v1703_v59  ;;  %v1289_v2 = vpop.f32.mrb[21].mxu1 }
 0x77d   :  { %v1290_v62 = vadd.f32 %v1703_v59, %v1289_v2  ;;  %v1853_v63 = vpop.f32.mrb[22].mxu1 }
 0x77e   :  { %v1306_v0 = vmul.f32 %v1298_v61, %v1298_v61  ;;  %v1301_v3 = vadd.f32 %v1853_v63, %v1703_v59  ;;  %v1292_v1 = vpop.f32.mrb[23].mxu1 }
 0x77f   :  { %v1304_v4 = vmul.f32 %v1290_v62, %v1290_v62  ;;  %v1293_v5 = vadd.f32 %v1703_v59, %v1292_v1 }
 0x780   :  { %v1310_v7 = vmul.f32 %v1306_v0, %v1298_v61  ;;  %v1307_v8 = vmul.f32 %v1301_v3, %v1301_v3 }
 0x781   :  { %v1308_v9 = vmul.f32 %v1304_v4, %v1290_v62  ;;  %v1305_v6 = vmul.f32 %v1293_v5, %v1293_v5 }
 0x782   :  { %v1314_v11 = vmul.f32 0.044715, %v1310_v7  ;;  %v1311_v12 = vmul.f32 %v1307_v8, %v1301_v3 }
 0x783   :  { %v1312_v13 = vmul.f32 0.044715, %v1308_v9  ;;  %v1309_v14 = vmul.f32 %v1305_v6, %v1293_v5 }
 0x784   :  { %v1318_v15 = vadd.f32 %v1314_v11, %v1298_v61  ;;  %v1315_v16 = vmul.f32 0.044715, %v1311_v12 }
 0x785   :  { %v1316_v17 = vadd.f32 %v1312_v13, %v1290_v62  ;;  %v1313_v18 = vmul.f32 0.044715, %v1309_v14 }
 0x786   :  { %v1322_v19 = vmul.f32 0.7978846, %v1318_v15  ;;  %v1319_v20 = vadd.f32 %v1315_v16, %v1301_v3  ;;  %v1918_v16 = vld [vmem:[%s2669_s18] sm:$0xff]  }
 0x787   :  { %v1320_v21 = vmul.f32 0.7978846, %v1316_v17  ;;  %v1317_v22 = vadd.f32 %v1313_v18, %v1293_v5  ;;  %1874 = vmatprep.subr.bf16.mxu1 %v1918_v16  ;;  %v1919_v17 = vld [vmem:[%s2669_s18 + $0x8] sm:$0xff]  }
 0x788   :  { %1944 = vtanh.f32 %v1322_v19  ;;  %v1323_v23 = vmul.f32 0.7978846, %v1319_v20  ;;  %1875 = vmatpush3.bf16.msra.mxu1 %v1918_v16 }
 0x789   :  { %1946 = vtanh.f32 %v1320_v21  ;;  %v1321_v24 = vmul.f32 0.7978846, %v1317_v22  ;;  %1876 = vmatprep.subr.bf16.mxu1 %v1919_v17 }
 0x78a   :  { %1948 = vtanh.f32 %v1323_v23 }
 0x78b   :  { %1950 = vtanh.f32 %v1321_v24 }
 0x78c   :  { %1877 = vmatpush3.bf16.msra.mxu1 %v1919_v17 }
 0x792   :  { %v1945_v25 = vpop.eup %1944 }
 0x793   :  { %v1947_v26 = vpop.eup %1946  ;;  %v1330_v27 = vadd.f32 1.0, %v1945_v25 }
 0x794   :  { %v1949_v28 = vpop.eup %1948  ;;  %v1328_v29 = vadd.f32 1.0, %v1947_v26 }
 0x795   :  { %v1951_v30 = vpop.eup %1950  ;;  %v1334_v31 = vmul.f32 0.5, %v1330_v27  ;;  %v1331_v32 = vadd.f32 1.0, %v1949_v28 }
 0x796   :  { %v1329_v33 = vadd.f32 1.0, %v1951_v30  ;;  %v1332_v34 = vmul.f32 0.5, %v1328_v29 }
 0x797   :  { %v1335_v35 = vmul.f32 0.5, %v1331_v32  ;;  %v1338_v37 = vmul.f32 %v1334_v31, %v1298_v61  ;;  %v1717_v31 = vld [vmem:[%s2667_s16] ss:$0 sm:$0xff]  ;;  %s2208_s16 = smov [#allocation16]  }
 0x798   :  { %v1333_v36 = vmul.f32 0.5, %v1329_v33  ;;  %v1336_v39 = vmul.f32 %v1332_v34, %v1290_v62  ;;  %v1718_v34 = vld [vmem:[%s2668_s17] ss:$0 sm:$0xff]  ;;  %s1633_s17 = sshll.u32 %s2208_s16, 4  ;;  %s1634_s17 = int_to_ptr.vmem [resolvable:$true] %s1633_s17 }
 0x799   :  { %v1339_v38 = vmul.f32 %v1335_v35, %v1301_v3  ;;  %s2136_s3 = scalar_lea.vmem %s1634_s17, 512  ;;  %p2141_p9 = scmp.lt.s32.totalorder %s1634_s17, %s1634_s17 }
 0x79a   :  { %v1337_v10 = vmul.f32 %v1333_v36, %v1293_v5  ;;  %p2137_p8 = scmp.ne.s32.totalorder %s1634_s17, %s2136_s3  ;;  %p2142_p10 = scmp.lt.s32.totalorder %s2136_s3, %s2136_s3 }
 0x79b   :  { %v1341_v40 = vpack.c.bf16 %v1339_v38, %v1338_v37 }
 0x79c   :  { %v1340_v41 = vpack.c.bf16 %v1337_v10, %v1336_v39  ;;  %p2143_p11 = por %p2142_p10, %p2141_p9 }
 0x79e   :  { %1870 = vmatprep.mubr.bf16.mxu0 %v1340_v41  ;;  %p2144_p12 = pnand %p2143_p11, %p2137_p8 }
 0x79f   :  { %1871 = vmatmul.mubr.bf16.vlgmr.msra.gmra.mrb[12].mxu0 %v1341_v40 }
 0x872   :  { %v1872_v43 = vpop.f32.mrb[12].mxu0 }
 0x873   :  { %v1447_v46 = vpop.f32.mrb[13].mxu0  ;;  %v1456_v47 = vadd.f32 %v1872_v43, %v1708_v42 }
 0x874   :  { %v1448_v50 = vadd.f32 %v1708_v42, %v1447_v46  ;;  %v1873_v51 = vpop.f32.mrb[14].mxu0 }
 0x875   :  { %v1450_v52 = vpop.f32.mrb[15].mxu0  ;;  %v1459_v53 = vadd.f32 %v1873_v51, %v1708_v42  ;;  %v1464_v58 = vadd.f32 %v1456_v47, %v2554_v48 }
 0x876   :  { %v1451_v54 = vadd.f32 %v1708_v42, %v1450_v52  ;;  %v1462_v55 = vadd.f32 %v1448_v50, %v2547_v44 }
 0x877   :  { %v1465_v60 = vadd.f32 %v1459_v53, %v2556_v49  ;;  %v1474_v61 = vsel %vm196_vm0, %v1464_v58, 0.0 }
 0x878   :  { %v1468_v56 = vsel %vm196_vm0, %v1462_v55, 0.0  ;;  %v1463_v57 = vadd.f32 %v1451_v54, %v2549_v45 }
 0x879   :  { %1469 = vadd.xlane.f32.xlu0 %v1468_v56  ;;  %v1477_v2 = vsel %vm196_vm0, %v1465_v60, 0.0 }
 0x87a   :  { %v1471_v59 = vsel %vm196_vm0, %v1463_v57, 0.0 }
 0x87b   :  { %1472 = vadd.xlane.f32.xlu1 %v1471_v59 }
 0x87d   :  { %1475 = vadd.xlane.f32.xlu0 %v1474_v61 }
 0x87f   :  { %1478 = vadd.xlane.f32.xlu1 %v1477_v2 }
 0x906   :  { %v1470_v62 = vpop.xlane.xlu0 %1469 }
 0x907   :  { %v1480_v44 = vmul.f32 0.03125, %v1470_v62 }
 0x908   :  { %v1473_v63 = vpop.xlane.xlu1 %1472 }
 0x909   :  { %v1484_v0 = vsub.f32 %v1462_v55, %v1480_v44  ;;  %v1481_v3 = vmul.f32 0.03125, %v1473_v63 }
 0x90a   :  { %v1476_v45 = vpop.xlane.xlu0 %1475 }
 0x90b   :  { %v1485_v1 = vsub.f32 %v1463_v57, %v1481_v3  ;;  %v1482_v48 = vmul.f32 0.03125, %v1476_v45  ;;  %v1488_v4 = vmul.f32 %v1484_v0, %v1484_v0 }
 0x90c   :  { %v1479_v5 = vpop.xlane.xlu1 %1478 }
 0x90d   :  { %v1486_v7 = vsub.f32 %v1464_v58, %v1482_v48  ;;  %v1483_v8 = vmul.f32 0.03125, %v1479_v5  ;;  %v1492_v49 = vsel %vm196_vm0, %v1488_v4, 0.0  ;;  %v1489_v9 = vmul.f32 %v1485_v1, %v1485_v1 }
 0x90e   :  { %1493 = vadd.xlane.f32.xlu0 %v1492_v49 }
 0x90f   :  { %v1487_v6 = vsub.f32 %v1465_v60, %v1483_v8  ;;  %v1495_v11 = vsel %vm196_vm0, %v1489_v9, 0.0  ;;  %v1490_v12 = vmul.f32 %v1486_v7, %v1486_v7 }
 0x910   :  { %1496 = vadd.xlane.f32.xlu1 %v1495_v11 }
 0x911   :  { %v1498_v13 = vsel %vm196_vm0, %v1490_v12, 0.0  ;;  %v1491_v14 = vmul.f32 %v1487_v6, %v1487_v6 }
 0x912   :  { %1499 = vadd.xlane.f32.xlu0 %v1498_v13 }
 0x913   :  { %v1501_v15 = vsel %vm196_vm0, %v1491_v14, 0.0 }
 0x914   :  { %1502 = vadd.xlane.f32.xlu1 %v1501_v15 }
 0x99b   :  { %v1494_v18 = vpop.xlane.xlu0 %1493 }
 0x99c   :  { %v1504_v19 = vmul.f32 0.03125, %v1494_v18 }
 0x99d   :  { %v1497_v20 = vpop.xlane.xlu1 %1496 }
 0x99e   :  { %v1508_v21 = vadd.f32 1e-12, %v1504_v19  ;;  %v1505_v22 = vmul.f32 0.03125, %v1497_v20 }
 0x99f   :  { %v1500_v23 = vpop.xlane.xlu0 %1499 }
 0x9a0   :  { %1952 = vrsqrt.f32 %v1508_v21  ;;  %v1509_v24 = vadd.f32 1e-12, %v1505_v22  ;;  %v1506_v25 = vmul.f32 0.03125, %v1500_v23 }
 0x9a1   :  { %v1503_v26 = vpop.xlane.xlu1 %1502 }
 0x9a2   :  { %1954 = vrsqrt.f32 %v1509_v24  ;;  %v1510_v27 = vadd.f32 1e-12, %v1506_v25  ;;  %v1507_v28 = vmul.f32 0.03125, %v1503_v26 }
 0x9a4   :  { %1956 = vrsqrt.f32 %v1510_v27  ;;  %v1511_v29 = vadd.f32 1e-12, %v1507_v28 }
 0x9a6   :  { %1958 = vrsqrt.f32 %v1511_v29 }
 0x9aa   :  { %v1953_v30 = vpop.eup %1952 }
 0x9ab   :  { %v1516_v32 = vmul.f32 %v1953_v30, %v1484_v0 }
 0x9ac   :  { %v1955_v33 = vpop.eup %1954 }
 0x9ad   :  { %v1517_v35 = vmul.f32 %v1955_v33, %v1485_v1  ;;  %v1526_v36 = vmul.f32 %v1717_v31, %v1516_v32 }
 0x9ae   :  { %v1957_v37 = vpop.eup %1956 }
 0x9af   :  { %v1518_v38 = vmul.f32 %v1957_v37, %v1486_v7  ;;  %v1527_v39 = vmul.f32 %v1717_v31, %v1517_v35  ;;  %v1536_v10 = vadd.f32 %v1718_v34, %v1526_v36 }
 0x9b0   :  { %v1959_v40 = vpop.eup %1958 }
 0x9b1   :  { %v1528_v41 = vmul.f32 %v1717_v31, %v1518_v38  ;;  %v1519_v42 = vmul.f32 %v1959_v40, %v1487_v6  ;;  %v1537_v43 = vadd.f32 %v1718_v34, %v1527_v39  ;;  %1540 = vst.msk [vmem:[#allocation16] sm:$0xff] %vm196_vm0, %v1536_v10 }
 0x9b3   :  { %v1529_v46 = vmul.f32 %v1717_v31, %v1519_v42  ;;  %1541 = vst.msk [vmem:[#allocation16 + $0x8] sm:$0xff] %vm196_vm0, %v1537_v43  ;;  %v1544_v47 = vpack.c.bf16 %v1537_v43, %v1536_v10  ;;  %v1538_v50 = vadd.f32 %v1718_v34, %v1528_v41 }
 0x9b5   :  { %1878 = vmatprep.mubr.msk.bf16.mxu1 %vm196_vm0, %v1544_v47  ;;  %v1539_v51 = vadd.f32 %v1718_v34, %v1529_v46  ;;  %1542 = vst.msk [vmem:[#allocation16 + $0x10] sm:$0xff] %vm196_vm0, %v1538_v50 }
 0x9b7   :  { %v1545_v52 = vpack.c.bf16 %v1539_v51, %v1538_v50  ;;  %1543 = vst.msk [vmem:[#allocation16 + $0x18] sm:$0xff] %vm196_vm0, %v1539_v51 }
 0x9b9   :  { %1879 = vmatmul.mubr.msk.bf16.vlgmr.msra.gmra.mrb[24].mxu1 %vm196_vm0, %v1545_v52 }
 0x9ba   :  { %2147 = shalt.err (!%p2144_p12)
}
 0x9bb   :  { %s2148_s29 = scalar_lea.hbm %s2671_s20, 512 }
 0x9bc   :  { %p2149_p13 = scmp.ne.s32.totalorder %s2671_s20, %s2148_s29  ;;  %p2152_p0 = scmp.lt.u32.totalorder %s2148_s29, %s2671_s20 }
 0x9be   :  { %p2154_p1 = pnand %p2152_p0, %p2149_p13 }
 0x9c0   :  { %2157 = shalt.err (!%p2154_p1)
}
 0x9c1   :  { %s2209_s21 = smov 128   ;;  %s2210_s7 = smov 8   ;;  %v1719_v53 = vld [vmem:[%s2670_s19] ss:$0 sm:$0xff] }
 0x9c2   :  { %1639 = dma.vmem_to_hbm [thread:$0]  %s1634_s17, 512, %s2671_s20, [#allocation4], %s2209_s21, %s2209_s21, %s2210_s7  }
 0x9c3   :  { %s2211_s30 = smov [#allocation17]  }
 0x9c4   :  { %s1645_s11 = sshll.u32 %s2211_s30, 4  ;;  %s1646_s11 = int_to_ptr.vmem [resolvable:$true] %s1645_s11 }
 0x9c5   :  { %s2158_s20 = scalar_lea.vmem %s1646_s11, 512  ;;  %p2163_p3 = scmp.lt.s32.totalorder %s1646_s11, %s1646_s11 }
 0x9c6   :  { %p2159_p2 = scmp.ne.s32.totalorder %s1646_s11, %s2158_s20  ;;  %p2164_p4 = scmp.lt.s32.totalorder %s2158_s20, %s2158_s20 }
 0x9c8   :  { %p2165_p5 = por %p2164_p4, %p2163_p3 }
 0x9ca   :  { %p2166_p6 = pnand %p2165_p5, %p2159_p2 }
 0xa8c   :  { %v1880_v54 = vpop.f32.mrb[24].mxu1 }
 0xa8d   :  { %v1618_v55 = vadd.f32 %v1880_v54, %v1719_v53  ;;  %v1609_v56 = vpop.f32.mrb[25].mxu1 }
 0xa8e   :  { %v1610_v57 = vadd.f32 %v1719_v53, %v1609_v56  ;;  %v1881_v58 = vpop.f32.mrb[26].mxu1 }
 0xa8f   :  { %1626 = vst [vmem:[#allocation17 + $0x10] sm:$0xff] %v1618_v55  ;;  %v1621_v59 = vadd.f32 %v1881_v58, %v1719_v53  ;;  %v1612_v60 = vpop.f32.mrb[27].mxu1 }
 0xa90   :  { %1624 = vst [vmem:[#allocation17] sm:$0xff] %v1610_v57  ;;  %v1613_v61 = vadd.f32 %v1719_v53, %v1612_v60 }
 0xa91   :  { %1627 = vst [vmem:[#allocation17 + $0x18] sm:$0xff] %v1621_v59 }
 0xa92   :  { %1625 = vst [vmem:[#allocation17 + $0x8] sm:$0xff] %v1613_v61 }
 0xa93   :  { %2169 = shalt.err (!%p2166_p6)
}
 0xa94   :  { %s2692_s14 = sld [smem:[#allocation32_spill]] }
 0xa9a   :  { %s2170_s10 = scalar_lea.hbm %s2692_s14, 512 }
 0xa9b   :  { %p2171_p7 = scmp.ne.s32.totalorder %s2692_s14, %s2170_s10  ;;  %p2174_p8 = scmp.lt.u32.totalorder %s2170_s10, %s2692_s14 }
 0xa9d   :  { %p2176_p9 = pnand %p2174_p8, %p2171_p7 }
 0xa9f   :  { %2179 = shalt.err (!%p2176_p9)
}
 0xaa0   :  { %1651 = dma.vmem_to_hbm [thread:$0]  %s1646_s11, 512, %s2692_s14, [#allocation18], %s2209_s21, %s2209_s21, %s2210_s7  }
 0xaa1   :  { %2190 = dma.done.wait [#allocation4], 512  }
 0xaa2   :  { %2191 = vsyncadd [#allocation4], 4294966784 }
 0xaa3   :  { %2192 = dma.done.wait [#allocation18], 512  }
 0xaa4   :  { %2193 = vsyncadd [#allocation18], 4294966784 }
 0xaa5   :  { %1658 = vsyncpa [#allocation3], 1 }
 0xaa6   :  { %1659 = vsyncpa [#allocation6], 1 }
 0xaa7   :  { %1660 = vsyncpa [#allocation9], 1 }
 0xaa8   :  { %1661 = vsyncpa [#allocation12], 1 }
 0xaa9   :  { %1662 = vsyncpa [#allocation15], 1 }
 0xaaa   :  { %1663 = vsyncpa [#allocation4], 1 }
 0xaab   :  { %1664 = vsyncpa [#allocation18], 1 }

</bundles_post_ra>
